<compile_context>
chip_gen: v7x
topology: tpu7x:2x2x1
jax: 0.10.0
libtpu: 0.0.40
codegen_flags: <defaults>
</compile_context>

<pallas_src>
import functools

import jax
import jax.numpy as jnp
from jax import lax
from jax.experimental import pallas as pl
from jax.experimental.pallas import tpu as pltpu


def _round_up(x: int, m: int) -> int:
    return (x + m - 1) // m * m


def _pick_lane_tile(d_pad: int) -> int:
    # d_pad is always a multiple of 128; prefer the largest of 512/256/128
    # that divides it (256 matches the v6e/v7x MXU, 128 the v5e MXU).
    for cand in (512, 256, 128):
        if d_pad % cand == 0:
            return cand
    return 128


def _residual_linear_kernel(x_lhs_ref, w_ref, b_ref, x_res_ref, o_ref, acc_ref):
    # x_lhs_ref: (tm, tk)   activation slice along the contraction (K) axis
    # w_ref:     (tn, tk)   nn.Linear weight tile, original (D_out, D_in) layout
    # b_ref:     (1,  tn)   bias tile
    # x_res_ref: (tm, tn)   activation slice along the output (N) axis (residual)
    # o_ref:     (tm, tn)   output tile
    # acc_ref:   (tm, tn)   f32 accumulator scratch, resident across the K axis
    k = pl.program_id(2)

    @pl.when(k == 0)
    def _():
        acc_ref[...] = jnp.zeros_like(acc_ref)

    # x @ W.T on the MXU (contract last dim of x with last dim of W), f32 acc.
    acc_ref[...] += lax.dot_general(
        x_lhs_ref[...],
        w_ref[...],
        dimension_numbers=(((1,), (1,)), ((), ())),
        preferred_element_type=jnp.float32,
    )

    @pl.when(k == pl.num_programs(2) - 1)
    def _():
        h = acc_ref[...] + b_ref[...].astype(jnp.float32)
        h = jnp.maximum(h, 0.0)                       # ReLU on the VPU
        res = x_res_ref[...].astype(jnp.float32)      # residual in f32
        o_ref[...] = (res + h).astype(o_ref.dtype)


def residual_linear(x, weight, bias, *, tm=None, tn=None, tk=None,
                    mxu_dtype=None):
    """x: (..., D); weight: (D, D) in nn.Linear (D_out, D_in) layout; bias: (D,).

    mxu_dtype: optionally cast x/weight fed to the MXU (e.g. jnp.bfloat16 for
    peak v6e/v7x throughput); the residual add and accumulation stay in f32.
    """
    orig_shape = x.shape
    d = orig_shape[-1]
    x2 = x.reshape(-1, d)
    m = x2.shape[0]

    # ---- tile sizing: lane-dense, MXU-aligned, VMEM-bounded ----------------
    d_pad = _round_up(d, 128)
    lane_tile = _pick_lane_tile(d_pad)
    if tn is None:
        tn = lane_tile
    if tk is None:
        tk = lane_tile
    if tm is None:
        tm = min(512, _round_up(m, 8))
    m_pad = _round_up(m, tm)

    # ---- pad to tile boundaries (zeros are semantically inert here) --------
    x_pad = jnp.pad(x2, ((0, m_pad - m), (0, d_pad - d)))
    w_pad = jnp.pad(weight, ((0, d_pad - d), (0, d_pad - d)))
    b_pad = jnp.pad(bias, ((0, d_pad - d),)).reshape(1, d_pad)

    x_lhs = x_pad
    if mxu_dtype is not None:
        x_lhs = x_lhs.astype(mxu_dtype)
        w_pad = w_pad.astype(mxu_dtype)

    grid = (m_pad // tm, d_pad // tn, d_pad // tk)

    # ---- VMEM budget: double-buffered tiles + accumulator + headroom -------
    x_b = jnp.dtype(x_lhs.dtype).itemsize
    w_b = jnp.dtype(w_pad.dtype).itemsize
    o_b = jnp.dtype(x.dtype).itemsize
    tile_bytes = (
        2 * tm * tk * x_b          # x (matmul operand), double-buffered
        + 2 * tn * tk * w_b        # weight tile
        + 2 * tn * 4               # bias tile
        + 2 * tm * tn * o_b        # x (residual operand)
        + 2 * tm * tn * o_b        # output tile
        + tm * tn * 4              # f32 accumulator scratch
    )
    vmem_limit = min(64 * 1024 * 1024,
                     max(tile_bytes + (4 << 20), 32 * 1024 * 1024))

    cost = pl.CostEstimate(
        flops=2 * m * d * d,
        transcendentals=0,
        bytes_accessed=(2 * m * d * o_b + d * d * w_b + d * 4 + m * d * o_b),
    )

    out = pl.pallas_call(
        _residual_linear_kernel,
        out_shape=jax.ShapeDtypeStruct((m_pad, d_pad), x.dtype),
        grid_spec=pltpu.PrefetchScalarGridSpec(
            num_scalar_prefetch=0,
            grid=grid,
            in_specs=[
                pl.BlockSpec((tm, tk), lambda i, j, k: (i, k)),   # x (LHS)
                pl.BlockSpec((tn, tk), lambda i, j, k: (j, k)),   # weight
                pl.BlockSpec((1, tn), lambda i, j, k: (0, j)),    # bias
                pl.BlockSpec((tm, tn), lambda i, j, k: (i, j)),   # x (residual)
            ],
            out_specs=pl.BlockSpec((tm, tn), lambda i, j, k: (i, j)),
            scratch_shapes=[pltpu.VMEM((tm, tn), jnp.float32)],
        ),
        compiler_params=pltpu.CompilerParams(
            dimension_semantics=("parallel", "parallel", "arbitrary"),
            vmem_limit_bytes=vmem_limit,
        ),
        cost_estimate=cost,
    )(x_lhs, w_pad, b_pad, x_pad)

    return out[:m, :d].reshape(orig_shape)


if __name__ == "__main__":
    d_int = 32
    batch, seq = 2, 8               # 16 rows after flattening

    key = jax.random.PRNGKey(0)
    kx, kw, kb = jax.random.split(key, 3)

    x = jax.random.normal(kx, (batch, seq, d_int), dtype=jnp.float32)
    # Deterministic nn.Linear-style init: U(-1/sqrt(d), 1/sqrt(d))
    bound = 1.0 / (d_int ** 0.5)
    weight = jax.random.uniform(kw, (d_int, d_int), jnp.float32, -bound, bound)
    bias = jax.random.uniform(kb, (d_int,), jnp.float32, -bound, bound)

    fn = jax.jit(functools.partial(residual_linear))
    y = fn(x, weight, bias)
    y = jax.block_until_ready(y)

    # Reference check in plain JAX (matches the PyTorch module).
    ref = x + jnp.maximum(x @ weight.T + bias, 0.0)
    assert jnp.allclose(y, ref, atol=1e-5, rtol=1e-5), "mismatch vs reference"

    print("KERNEL_OK")
</pallas_src>

<mosaic_0001>
module attributes {stable_mosaic.version = 11 : i64} {
  func.func @_residual_linear_kernel(%arg0: i32, %arg1: i32, %arg2: i32, %arg3: memref<16x128xf32, #tpu.memory_space<vmem>>, %arg4: memref<128x128xf32, #tpu.memory_space<vmem>>, %arg5: memref<1x128xf32, #tpu.memory_space<vmem>>, %arg6: memref<16x128xf32, #tpu.memory_space<vmem>>, %arg7: memref<16x128xf32, #tpu.memory_space<vmem>>, %arg8: memref<16x128xf32, #tpu.memory_space<vmem>>) attributes {dimension_semantics = [#tpu.dimension_semantics<parallel>, #tpu.dimension_semantics<parallel>, #tpu.dimension_semantics<arbitrary>], iteration_bounds = array<i64: 1, 1, 1>, scalar_prefetch = 0 : i64, scratch_operands = 1 : i64, tpu.core_type = #tpu.core_type<tc>, window_params = [{transform_indices = @transform_0, window_bounds = array<i64: 16, 128>}, {transform_indices = @transform_1, window_bounds = array<i64: 128, 128>}, {transform_indices = @transform_2, window_bounds = array<i64: 1, 128>}, {transform_indices = @transform_3, window_bounds = array<i64: 16, 128>}, {transform_indices = @transform_4, window_bounds = array<i64: 16, 128>}]} {
    %c0_i32 = arith.constant 0 : i32
    %0 = arith.cmpi eq, %arg2, %c0_i32 : i32
    %1 = arith.extui %0 : i1 to i32
    %c0_i32_0 = arith.constant 0 : i32
    %2 = arith.cmpi ne, %1, %c0_i32_0 : i32
    scf.if %2 {
      %cst_10 = arith.constant 0.000000e+00 : f32
      %12 = vector.broadcast %cst_10 : f32 to vector<16x128xf32>
      %c0_11 = arith.constant 0 : index
      %c0_12 = arith.constant 0 : index
      %13 = vector.load %arg8[%c0_11, %c0_12] : memref<16x128xf32, #tpu.memory_space<vmem>>, vector<16x128xf32>
      tpu.vector_store %arg8[%c0_11, %c0_12], %12 {strides = array<i32>} : memref<16x128xf32, #tpu.memory_space<vmem>>, vector<16x128xf32>,
    } else {
    }
    %c0 = arith.constant 0 : index
    %c0_1 = arith.constant 0 : index
    %3 = vector.load %arg8[%c0, %c0_1] : memref<16x128xf32, #tpu.memory_space<vmem>>, vector<16x128xf32>
    %c0_2 = arith.constant 0 : index
    %c0_3 = arith.constant 0 : index
    %4 = vector.load %arg3[%c0_2, %c0_3] : memref<16x128xf32, #tpu.memory_space<vmem>>, vector<16x128xf32>
    %c0_4 = arith.constant 0 : index
    %c0_5 = arith.constant 0 : index
    %5 = vector.load %arg4[%c0_4, %c0_5] : memref<128x128xf32, #tpu.memory_space<vmem>>, vector<128x128xf32>
    %cst = arith.constant dense<0.000000e+00> : vector<16x128xf32>
    %6 = tpu.matmul %4, %5, %cst {dimension_numbers = #tpu.dot_dimension_numbers<[1], [1], [0], [0], [0, 0, 1, 0], [], []>} : vector<16x128xf32>, vector<128x128xf32>, vector<16x128xf32> -> vector<16x128xf32>
    %7 = arith.addf %3, %6 : vector<16x128xf32>
    %c0_6 = arith.constant 0 : index
    %c0_7 = arith.constant 0 : index
    %8 = vector.load %arg8[%c0_6, %c0_7] : memref<16x128xf32, #tpu.memory_space<vmem>>, vector<16x128xf32>
    tpu.vector_store %arg8[%c0_6, %c0_7], %7 {strides = array<i32>} : memref<16x128xf32, #tpu.memory_space<vmem>>, vector<16x128xf32>,
    %c0_i32_8 = arith.constant 0 : i32
    %9 = arith.cmpi eq, %arg2, %c0_i32_8 : i32
    %10 = arith.extui %9 : i1 to i32
    %c0_i32_9 = arith.constant 0 : i32
    %11 = arith.cmpi ne, %10, %c0_i32_9 : i32
    scf.if %11 {
      %c0_10 = arith.constant 0 : index
      %c0_11 = arith.constant 0 : index
      %12 = vector.load %arg8[%c0_10, %c0_11] : memref<16x128xf32, #tpu.memory_space<vmem>>, vector<16x128xf32>
      %c0_12 = arith.constant 0 : index
      %c0_13 = arith.constant 0 : index
      %13 = vector.load %arg5[%c0_12, %c0_13] : memref<1x128xf32, #tpu.memory_space<vmem>>, vector<1x128xf32>
      %14 = vector.broadcast %13 : vector<1x128xf32> to vector<16x128xf32>
      %15 = arith.addf %12, %14 : vector<16x128xf32>
      %cst_14 = arith.constant 0.000000e+00 : f32
      %16 = vector.broadcast %cst_14 : f32 to vector<16x128xf32>
      %17 = arith.maximumf %15, %16 : vector<16x128xf32>
      %c0_15 = arith.constant 0 : index
      %c0_16 = arith.constant 0 : index
      %18 = vector.load %arg6[%c0_15, %c0_16] : memref<16x128xf32, #tpu.memory_space<vmem>>, vector<16x128xf32>
      %19 = arith.addf %18, %17 : vector<16x128xf32>
      %c0_17 = arith.constant 0 : index
      %c0_18 = arith.constant 0 : index
      %20 = vector.load %arg7[%c0_17, %c0_18] : memref<16x128xf32, #tpu.memory_space<vmem>>, vector<16x128xf32>
      tpu.vector_store %arg7[%c0_17, %c0_18], %19 {strides = array<i32>} : memref<16x128xf32, #tpu.memory_space<vmem>>, vector<16x128xf32>,
    } else {
    }
    return
  }
  func.func @transform_0(%arg0: i32, %arg1: i32, %arg2: i32) -> (i32, i32) {
    %c0_i32 = arith.constant 0 : i32
    return %arg0, %arg2 : i32, i32
  }
  func.func @transform_1(%arg0: i32, %arg1: i32, %arg2: i32) -> (i32, i32) {
    %c0_i32 = arith.constant 0 : i32
    return %arg1, %arg2 : i32, i32
  }
  func.func @transform_2(%arg0: i32, %arg1: i32, %arg2: i32) -> (i32, i32) {
    %c0_i32 = arith.constant 0 : i32
    %c0_i32_0 = arith.constant 0 : i32
    return %c0_i32, %arg1 : i32, i32
  }
  func.func @transform_3(%arg0: i32, %arg1: i32, %arg2: i32) -> (i32, i32) {
    %c0_i32 = arith.constant 0 : i32
    return %arg0, %arg1 : i32, i32
  }
  func.func @transform_4(%arg0: i32, %arg1: i32, %arg2: i32) -> (i32, i32) {
    %c0_i32 = arith.constant 0 : i32
    return %arg0, %arg1 : i32, i32
  }
}

</mosaic_0001>

<bundles_post_ra>
// kernel: residual_linear.1
= control target key start
LH: loop header
LB: loop body
LE: loop exit
PB: predicated region body
PF: predicated region fallthrough
CT: control target
= control target key end

     0   :  { %s328_s1 = inlined_call_operand.vmem [shape: f32[128,128], index: 1, kind: input, shape index: {}]   ;;  %s329_s0 = inlined_call_operand.vmem [shape: f32[16,128], index: 0, kind: input, shape index: {}, may-alias: {0,3}]   ;;  %s330_s2 = inlined_call_operand.vmem [shape: f32[1,128], index: 2, kind: input, shape index: {}]   ;;  %s331_s3 = inlined_call_operand.vmem [shape: f32[16,128], index: 3, kind: input, shape index: {}, may-alias: {0,3}]   ;;  %s332_s4 = inlined_call_operand.vmem [shape: f32[16,128], index: 4, kind: output, shape index: {}]  }
   0x1   :  { %v27_v0 = vld [vmem:[%s328_s1] sm:$0xff]  ;;  %v28_v1 = vld [vmem:[%s328_s1 + $0x8] sm:$0xff]  ;;  %v29_v2 = vld [vmem:[%s328_s1 + $0x10] sm:$0xff] }
   0x2   :  { %v202_v3 = vpack.c.bf16 %v28_v1, %v27_v0  ;;  %v30_v4 = vld [vmem:[%s328_s1 + $0x18] sm:$0xff]  ;;  %v25_v6 = vld [vmem:[%s329_s0] sm:$0xff]  ;;  %v32_v8 = vld [vmem:[%s328_s1 + $0x28] sm:$0xff] }
   0x3   :  { %v206_v5 = vpack.c.bf16 %v30_v4, %v29_v2  ;;  %v31_v7 = vld [vmem:[%s328_s1 + $0x20] sm:$0xff]  ;;  %199 = vmatprep.mubr.f32.mxu0 %v25_v6  ;;  %v33_v10 = vld [vmem:[%s328_s1 + $0x30] sm:$0xff]  ;;  %v34_v11 = vld [vmem:[%s328_s1 + $0x38] sm:$0xff] }
   0x4   :  { %203 = vmatprep.subr.bf16.mxu0 %v202_v3  ;;  %v210_v9 = vpack.c.bf16 %v32_v8, %v31_v7  ;;  %v214_v12 = vpack.c.bf16 %v34_v11, %v33_v10  ;;  %v35_v13 = vld [vmem:[%s328_s1 + $0x40] sm:$0xff]  ;;  %v36_v14 = vld [vmem:[%s328_s1 + $0x48] sm:$0xff]  ;;  %v37_v16 = vld [vmem:[%s328_s1 + $0x50] sm:$0xff] }
   0x5   :  { %205 = vmatpush3.bf16.xpose.msra.mxu0 %v202_v3  ;;  %v218_v15 = vpack.c.bf16 %v36_v14, %v35_v13  ;;  %v38_v17 = vld [vmem:[%s328_s1 + $0x58] sm:$0xff]  ;;  %v39_v19 = vld [vmem:[%s328_s1 + $0x60] sm:$0xff]  ;;  %v40_v20 = vld [vmem:[%s328_s1 + $0x68] sm:$0xff] }
   0x6   :  { %207 = vmatprep.subr.bf16.mxu0 %v206_v5  ;;  %v222_v18 = vpack.c.bf16 %v38_v17, %v37_v16  ;;  %v226_v21 = vpack.c.bf16 %v40_v20, %v39_v19  ;;  %v41_v22 = vld [vmem:[%s328_s1 + $0x70] sm:$0xff]  ;;  %v42_v23 = vld [vmem:[%s328_s1 + $0x78] sm:$0xff]  ;;  %v26_v25 = vld [vmem:[%s329_s0 + $0x8] sm:$0xff] }
   0x7   :  { %v230_v24 = vpack.c.bf16 %v42_v23, %v41_v22  ;;  %v148_v26 = vld [vmem:[%s330_s2] ss:$0 sm:$0xff]  ;;  %v139_v30 = vld [vmem:[%s331_s3 + $0x8] sm:$0xff] }
   0x8   :  { %v138_v33 = vld [vmem:[%s331_s3] sm:$0xff] }
   0xd   :  { %209 = vmatpush3.bf16.xpose.msra.mxu0 %v206_v5 }
   0xe   :  { %211 = vmatprep.subr.bf16.mxu0 %v210_v9 }
  0x15   :  { %213 = vmatpush3.bf16.xpose.msra.mxu0 %v210_v9 }
  0x16   :  { %215 = vmatprep.subr.bf16.mxu0 %v214_v12 }
  0x1d   :  { %217 = vmatpush3.bf16.xpose.msra.mxu0 %v214_v12 }
  0x1e   :  { %219 = vmatprep.subr.bf16.mxu0 %v218_v15 }
  0x25   :  { %221 = vmatpush3.bf16.xpose.msra.mxu0 %v218_v15 }
  0x26   :  { %223 = vmatprep.subr.bf16.mxu0 %v222_v18 }
  0x2d   :  { %225 = vmatpush3.bf16.xpose.msra.mxu0 %v222_v18 }
  0x2e   :  { %227 = vmatprep.subr.bf16.mxu0 %v226_v21 }
  0x35   :  { %229 = vmatpush3.bf16.xpose.msra.mxu0 %v226_v21 }
  0x36   :  { %231 = vmatprep.subr.bf16.mxu0 %v230_v24 }
  0x3d   :  { %233 = vmatpush3.bf16.xpose.msra.mxu0 %v230_v24 }
  0x44   :  { %200 = vmatmul.mubr.f32.vlgmr.msra.gmra.mrb[0].mxu0 %v26_v25 }
 0x117   :  { %v201_v27 = vpop.f32.mrb[0].mxu0 }
 0x118   :  { %v135_v28 = vadd.f32 %v201_v27, %v148_v26  ;;  %v109_v29 = vpop.f32.mrb[1].mxu0 }
 0x119   :  { %v134_v31 = vadd.f32 %v148_v26, %v109_v29 }
 0x11a   :  { %v137_v32 = vmax.f32 %v135_v28, 0.0 }
 0x11b   :  { %v136_v34 = vmax.f32 %v134_v31, 0.0 }
 0x11c   :  { %v141_v35 = vadd.f32 %v139_v30, %v137_v32 }
 0x11d   :  { %v140_v36 = vadd.f32 %v138_v33, %v136_v34 }
 0x11e   :  { %143 = vst [vmem:[%s332_s4 + $0x8] sm:$0xff] %v141_v35 }
 0x11f   :  { %142 = vst [vmem:[%s332_s4] sm:$0xff] %v140_v36 }

</bundles_post_ra>
